<compile_context>
chip_gen: v6e
topology: v6e:2x2x1
jax: 0.10.0
libtpu: 0.0.40
codegen_flags: <defaults>
</compile_context>

<pallas_src>
import functools

import jax
import jax.numpy as jnp
from jax import lax
from jax.experimental import pallas as pl
from jax.experimental.pallas import tpu as pltpu


def convblock_kernel(x_ref, band_ref, scale_ref, bias_ref, o_ref):
    # x_ref:     (1, H, W*C_in)        bf16, one batch element, W/C folded into lanes
    # band_ref:  (3, W*C_in, W*C_out)  bf16, per-kh band weight matrices
    # scale_ref: (1, W*C_out)          f32, folded BN scale (per channel, tiled over W)
    # bias_ref:  (1, W*C_out)          f32, folded BN bias (conv bias included)
    # o_ref:     (1, H, W*C_out)       f32
    H = o_ref.shape[1]
    NC = o_ref.shape[2]

    x = x_ref[0]                                            # (H, KC) bf16

    # Three full-height lane-dense MXU matmuls, one per kernel row kh.
    c_mid = jnp.dot(x, band_ref[1], preferred_element_type=jnp.float32)
    # kh=0: input row h contributes to output row h+1.
    c_top = jnp.dot(x, band_ref[0], preferred_element_type=jnp.float32)
    # kh=2: input row h contributes to output row h-1.
    c_bot = jnp.dot(x, band_ref[2], preferred_element_type=jnp.float32)

    # Place the kh=0 / kh=2 contributions with sublane rolls (XLU, separate
    # bundle slot) and zero the wrapped rows (they correspond to the H-padding
    # of the conv).  Everything stays in registers; no VMEM accumulator.
    row = lax.broadcasted_iota(jnp.int32, (H, NC), 0)
    acc = c_mid
    acc = acc + jnp.where(row > 0,
                          pltpu.roll(c_top, shift=1, axis=0), 0.0)
    acc = acc + jnp.where(row < H - 1,
                          pltpu.roll(c_bot, shift=H - 1, axis=0), 0.0)

    # Folded BatchNorm (eval mode) + ReLU epilogue, f32.
    y = acc * scale_ref[...] + bias_ref[...]
    o_ref[0] = jnp.maximum(y, 0.0).astype(o_ref.dtype)


@functools.partial(jax.jit, static_argnames=("eps",))
def conv_block_forward(x_nchw, conv_w, conv_b, bn_gamma, bn_beta,
                       bn_mean, bn_var, eps=1e-5):
    """x_nchw: (N, C_in, H, W) float32.  Returns (N, C_out, H, W) float32."""
    N, C_in, H, W = x_nchw.shape
    C_out = conv_w.shape[0]
    KC = W * C_in      # folded contraction width
    NC = W * C_out     # folded (lane-dense) output width

    # ---- layout prep (plain JAX glue) ----
    x_rows = (jnp.transpose(x_nchw, (0, 2, 3, 1))           # (N, H, W, C_in)
              .reshape(N, H, KC)                            # fold W, C_in into lanes
              .astype(jnp.bfloat16))

    # Band matrices:
    #   bands[kh, w_in*C_in + ci, w_out*C_out + co] = conv_w[co, ci, kh, kw]
    #   where kw = w_in - w_out + 1 in {0,1,2}; out-of-range taps (the W
    #   zero-padding) are simply absent (zero rows of the band).
    w_hwio = jnp.transpose(conv_w, (2, 3, 1, 0))            # (3, 3, C_in, C_out) f32
    wi = jnp.arange(W)[None, :, None]                       # w_in
    wo = jnp.arange(W)[None, None, :]                       # w_out
    kw = jnp.arange(3)[:, None, None]
    mask = (wi == wo + kw - 1).astype(w_hwio.dtype)         # (3, W, W)
    bands = jnp.einsum("qab,kqco->kacbo", mask, w_hwio)     # (3, W, C_in, W, C_out)
    bands = bands.reshape(3, KC, NC).astype(jnp.bfloat16)

    # Fold BatchNorm (eval mode) + conv bias into per-channel scale/bias,
    # tiled over W to match the folded lane layout.
    inv_std = lax.rsqrt(bn_var + eps)
    scale = bn_gamma * inv_std
    bias = bn_beta + (conv_b - bn_mean) * scale
    scale_row = jnp.tile(scale, W).reshape(1, NC).astype(jnp.float32)
    bias_row = jnp.tile(bias, W).reshape(1, NC).astype(jnp.float32)

    flops = 2 * N * H * W * 9 * C_in * C_out
    bytes_accessed = (N * H * KC * 2          # bf16 activations in
                      + 3 * KC * NC * 2       # bf16 band weights
                      + N * H * NC * 4        # f32 output
                      + 2 * NC * 4)           # scale + bias

    out_rows = pl.pallas_call(
        convblock_kernel,
        out_shape=jax.ShapeDtypeStruct((N, H, NC), jnp.float32),
        grid=(N,),
        in_specs=[
            pl.BlockSpec((1, H, KC), lambda n: (n, 0, 0)),
            pl.BlockSpec((3, KC, NC), lambda n: (0, 0, 0)),
            pl.BlockSpec((1, NC), lambda n: (0, 0)),
            pl.BlockSpec((1, NC), lambda n: (0, 0)),
        ],
        out_specs=pl.BlockSpec((1, H, NC), lambda n: (n, 0, 0)),
        compiler_params=pltpu.CompilerParams(
            dimension_semantics=("parallel",)),
        cost_estimate=pl.CostEstimate(flops=flops, transcendentals=0,
                                      bytes_accessed=bytes_accessed),
    )(x_rows, bands, scale_row, bias_row)

    out_nhwc = out_rows.reshape(N, H, W, C_out)
    return jnp.transpose(out_nhwc, (0, 3, 1, 2))            # back to NCHW


def reference_forward(x_nchw, conv_w, conv_b, bn_gamma, bn_beta,
                      bn_mean, bn_var, eps=1e-5):
    """Pure-JAX reference (lax conv, full f32) for correctness checking."""
    y = lax.conv_general_dilated(
        x_nchw, conv_w, window_strides=(1, 1), padding=((1, 1), (1, 1)),
        dimension_numbers=("NCHW", "OIHW", "NCHW"),
        precision=lax.Precision.HIGHEST)
    y = y + conv_b.reshape(1, -1, 1, 1)
    y = (y - bn_mean.reshape(1, -1, 1, 1)) * lax.rsqrt(
        bn_var.reshape(1, -1, 1, 1) + eps)
    y = y * bn_gamma.reshape(1, -1, 1, 1) + bn_beta.reshape(1, -1, 1, 1)
    return jnp.maximum(y, 0.0)


if __name__ == "__main__":
    key = jax.random.PRNGKey(0)
    N, C_in, C_out, H, W = 2, 4, 8, 16, 16

    k_x, k_w, k_b = jax.random.split(key, 3)
    x = jax.random.normal(k_x, (N, C_in, H, W), dtype=jnp.float32)

    # Conv2d params (deterministic synthetic init).
    fan_in = C_in * 3 * 3
    bound = 1.0 / (fan_in ** 0.5)
    conv_w = jax.random.uniform(k_w, (C_out, C_in, 3, 3),
                                minval=-bound, maxval=bound,
                                dtype=jnp.float32)
    conv_b = jax.random.uniform(k_b, (C_out,), minval=-bound, maxval=bound,
                                dtype=jnp.float32)

    # BatchNorm2d params — PyTorch default init (eval-mode semantics).
    bn_gamma = jnp.ones((C_out,), jnp.float32)
    bn_beta = jnp.zeros((C_out,), jnp.float32)
    bn_mean = jnp.zeros((C_out,), jnp.float32)
    bn_var = jnp.ones((C_out,), jnp.float32)

    out = conv_block_forward(x, conv_w, conv_b, bn_gamma, bn_beta,
                             bn_mean, bn_var)
    out = jax.block_until_ready(out)
    assert out.shape == (N, C_out, H, W)

    # Tight check: reference on bf16-quantized inputs (same input rounding as
    # the kernel, f32 accumulation in both) -> only summation-order noise.
    xq = x.astype(jnp.bfloat16).astype(jnp.float32)
    wq = conv_w.astype(jnp.bfloat16).astype(jnp.float32)
    ref_q = reference_forward(xq, wq, conv_b, bn_gamma, bn_beta,
                              bn_mean, bn_var)
    assert jnp.allclose(out, ref_q, atol=1e-3, rtol=1e-3)

    # Loose check against the exact f32 module semantics (bf16 input cast).
    ref = reference_forward(x, conv_w, conv_b, bn_gamma, bn_beta,
                            bn_mean, bn_var)
    assert jnp.allclose(out, ref, atol=5e-2, rtol=5e-2)

    print("KERNEL_OK")
</pallas_src>

<mosaic_0001>
module attributes {stable_mosaic.version = 11 : i64} {
  func.func @convblock_kernel(%arg0: i32, %arg1: memref<1x16x64xbf16, #tpu.memory_space<vmem>>, %arg2: memref<3x64x128xbf16, #tpu.memory_space<vmem>>, %arg3: memref<1x128xf32, #tpu.memory_space<vmem>>, %arg4: memref<1x128xf32, #tpu.memory_space<vmem>>, %arg5: memref<1x16x128xf32, #tpu.memory_space<vmem>>) attributes {dimension_semantics = [#tpu.dimension_semantics<parallel>], iteration_bounds = array<i64: 2>, scalar_prefetch = 0 : i64, scratch_operands = 0 : i64, tpu.core_type = #tpu.core_type<tc>, window_params = [{transform_indices = @transform_0, window_bounds = array<i64: 1, 16, 64>}, {pipeline_mode = #tpu.pipeline_mode<synchronous>, transform_indices = @transform_1, window_bounds = array<i64: 3, 64, 128>}, {pipeline_mode = #tpu.pipeline_mode<synchronous>, transform_indices = @transform_2, window_bounds = array<i64: 1, 128>}, {pipeline_mode = #tpu.pipeline_mode<synchronous>, transform_indices = @transform_3, window_bounds = array<i64: 1, 128>}, {transform_indices = @transform_4, window_bounds = array<i64: 1, 16, 128>}]} {
    %c0 = arith.constant 0 : index
    %c0_0 = arith.constant 0 : index
    %c0_1 = arith.constant 0 : index
    %0 = vector.load %arg1[%c0, %c0_0, %c0_1] : memref<1x16x64xbf16, #tpu.memory_space<vmem>>, vector<1x16x64xbf16>
    %1 = vector.shape_cast %0 : vector<1x16x64xbf16> to vector<16x64xbf16>
    %c1 = arith.constant 1 : index
    %c0_2 = arith.constant 0 : index
    %c0_3 = arith.constant 0 : index
    %2 = vector.load %arg2[%c1, %c0_2, %c0_3] : memref<3x64x128xbf16, #tpu.memory_space<vmem>>, vector<1x64x128xbf16>
    %3 = vector.shape_cast %2 : vector<1x64x128xbf16> to vector<64x128xbf16>
    %cst = arith.constant dense<0.000000e+00> : vector<16x128xf32>
    %4 = tpu.matmul %1, %3, %cst {dimension_numbers = #tpu.dot_dimension_numbers<[1], [0], [0], [1], [0, 0, 1, 1], [], []>} : vector<16x64xbf16>, vector<64x128xbf16>, vector<16x128xf32> -> vector<16x128xf32>
    %c0_4 = arith.constant 0 : index
    %c0_5 = arith.constant 0 : index
    %c0_6 = arith.constant 0 : index
    %5 = vector.load %arg2[%c0_4, %c0_5, %c0_6] : memref<3x64x128xbf16, #tpu.memory_space<vmem>>, vector<1x64x128xbf16>
    %6 = vector.shape_cast %5 : vector<1x64x128xbf16> to vector<64x128xbf16>
    %cst_7 = arith.constant dense<0.000000e+00> : vector<16x128xf32>
    %7 = tpu.matmul %1, %6, %cst_7 {dimension_numbers = #tpu.dot_dimension_numbers<[1], [0], [0], [1], [0, 0, 1, 1], [], []>} : vector<16x64xbf16>, vector<64x128xbf16>, vector<16x128xf32> -> vector<16x128xf32>
    %c2 = arith.constant 2 : index
    %c0_8 = arith.constant 0 : index
    %c0_9 = arith.constant 0 : index
    %8 = vector.load %arg2[%c2, %c0_8, %c0_9] : memref<3x64x128xbf16, #tpu.memory_space<vmem>>, vector<1x64x128xbf16>
    %9 = vector.shape_cast %8 : vector<1x64x128xbf16> to vector<64x128xbf16>
    %cst_10 = arith.constant dense<0.000000e+00> : vector<16x128xf32>
    %10 = tpu.matmul %1, %9, %cst_10 {dimension_numbers = #tpu.dot_dimension_numbers<[1], [0], [0], [1], [0, 0, 1, 1], [], []>} : vector<16x64xbf16>, vector<64x128xbf16>, vector<16x128xf32> -> vector<16x128xf32>
    %11 = tpu.iota {dimensions = array<i32: 0>} : vector<16x128xi32>
    %c0_i32 = arith.constant 0 : i32
    %12 = vector.broadcast %c0_i32 : i32 to vector<16x128xi32>
    %13 = arith.cmpi sgt, %11, %12 : vector<16x128xi32>
    %c1_i32 = arith.constant 1 : i32
    %14 = tpu.dynamic_rotate %7 by %c1_i32 dim 0 : vector<16x128xf32>, i32 -> vector<16x128xf32>
    %cst_11 = arith.constant 0.000000e+00 : f32
    %15 = vector.broadcast %cst_11 : f32 to vector<16x128xf32>
    %16 = arith.select %13, %14, %15 : vector<16x128xi1>, vector<16x128xf32>
    %17 = arith.addf %4, %16 : vector<16x128xf32>
    %c15_i32 = arith.constant 15 : i32
    %18 = vector.broadcast %c15_i32 : i32 to vector<16x128xi32>
    %19 = arith.cmpi slt, %11, %18 : vector<16x128xi32>
    %c15_i32_12 = arith.constant 15 : i32
    %20 = tpu.dynamic_rotate %10 by %c15_i32_12 dim 0 : vector<16x128xf32>, i32 -> vector<16x128xf32>
    %cst_13 = arith.constant 0.000000e+00 : f32
    %21 = vector.broadcast %cst_13 : f32 to vector<16x128xf32>
    %22 = arith.select %19, %20, %21 : vector<16x128xi1>, vector<16x128xf32>
    %23 = arith.addf %17, %22 : vector<16x128xf32>
    %c0_14 = arith.constant 0 : index
    %c0_15 = arith.constant 0 : index
    %24 = vector.load %arg3[%c0_14, %c0_15] : memref<1x128xf32, #tpu.memory_space<vmem>>, vector<1x128xf32>
    %25 = vector.broadcast %24 : vector<1x128xf32> to vector<16x128xf32>
    %26 = arith.mulf %23, %25 : vector<16x128xf32>
    %c0_16 = arith.constant 0 : index
    %c0_17 = arith.constant 0 : index
    %27 = vector.load %arg4[%c0_16, %c0_17] : memref<1x128xf32, #tpu.memory_space<vmem>>, vector<1x128xf32>
    %28 = vector.broadcast %27 : vector<1x128xf32> to vector<16x128xf32>
    %29 = arith.addf %26, %28 : vector<16x128xf32>
    %cst_18 = arith.constant 0.000000e+00 : f32
    %30 = vector.broadcast %cst_18 : f32 to vector<16x128xf32>
    %31 = arith.maximumf %29, %30 : vector<16x128xf32>
    %c0_19 = arith.constant 0 : index
    %c0_20 = arith.constant 0 : index
    %c0_21 = arith.constant 0 : index
    %32 = vector.load %arg5[%c0_19, %c0_20, %c0_21] : memref<1x16x128xf32, #tpu.memory_space<vmem>>, vector<1x16x128xf32>
    %33 = vector.shape_cast %32 : vector<1x16x128xf32> to vector<16x128xf32>
    %34 = vector.shape_cast %31 : vector<16x128xf32> to vector<1x16x128xf32>
    tpu.vector_store %arg5[%c0_19, %c0_20, %c0_21], %34 {strides = array<i32>} : memref<1x16x128xf32, #tpu.memory_space<vmem>>, vector<1x16x128xf32>,
    return
  }
  func.func @transform_0(%arg0: i32) -> (i32, i32, i32) {
    %c0_i32 = arith.constant 0 : i32
    %c0_i32_0 = arith.constant 0 : i32
    %c0_i32_1 = arith.constant 0 : i32
    return %arg0, %c0_i32, %c0_i32_0 : i32, i32, i32
  }
  func.func @transform_1(%arg0: i32) -> (i32, i32, i32) {
    %c0_i32 = arith.constant 0 : i32
    %c0_i32_0 = arith.constant 0 : i32
    %c0_i32_1 = arith.constant 0 : i32
    %c0_i32_2 = arith.constant 0 : i32
    return %c0_i32, %c0_i32_0, %c0_i32_1 : i32, i32, i32
  }
  func.func @transform_2(%arg0: i32) -> (i32, i32) {
    %c0_i32 = arith.constant 0 : i32
    %c0_i32_0 = arith.constant 0 : i32
    %c0_i32_1 = arith.constant 0 : i32
    return %c0_i32, %c0_i32_0 : i32, i32
  }
  func.func @transform_3(%arg0: i32) -> (i32, i32) {
    %c0_i32 = arith.constant 0 : i32
    %c0_i32_0 = arith.constant 0 : i32
    %c0_i32_1 = arith.constant 0 : i32
    return %c0_i32, %c0_i32_0 : i32, i32
  }
  func.func @transform_4(%arg0: i32) -> (i32, i32, i32) {
    %c0_i32 = arith.constant 0 : i32
    %c0_i32_0 = arith.constant 0 : i32
    %c0_i32_1 = arith.constant 0 : i32
    return %arg0, %c0_i32, %c0_i32_0 : i32, i32, i32
  }
}

</mosaic_0001>

<bundles_post_ra>
// kernel: tile.13
= control target key start
LH: loop header
LB: loop body
LE: loop exit
PB: predicated region body
PF: predicated region fallthrough
CT: control target
= control target key end

     0   :  { %s28_s0 = inlined_call_operand.vmem [shape: f32[8], index: 0, kind: input, shape index: {}]   ;;  %s29_s1 = inlined_call_operand.vmem [shape: f32[16,8], index: 1, kind: output, shape index: {}]  }
   0x1   :  { %v4_v0 = vld [vmem:[%s28_s0] ss:$0 sm:$0xff] }
   0x2   :  { %5 = vst [vmem:[%s29_s1] sm:$0xff] %v4_v0  ;;  %8 = vst [vmem:[%s29_s1 + $0x8] sm:$0xff] %v4_v0 }

// kernel: tile.14
= control target key start
LH: loop header
LB: loop body
LE: loop exit
PB: predicated region body
PF: predicated region fallthrough
CT: control target
= control target key end

     0   :  { %s133_s10 = smov 120   ;;  %s134_s11 = smov 104   ;;  %vm3_vm0 = vcmask 64512   ;;  %vm9_vm1 = vcmask 1048512   ;;  %vm15_vm2 = vcmask 982912   ;;  %vm21_vm3 = vcmask 917312   ;;  %s209_s0 = inlined_call_operand.vmem [shape: f32[16,8], index: 0, kind: input, shape index: {}]   ;;  %s210_s1 = inlined_call_operand.vmem [shape: f32[1,128], index: 1, kind: output, shape index: {}]  }
   0x1   :  { %v103_v0 = vld [vmem:[%s209_s0 + $0xf] sm:$0x1]   ;;  %v105_v1 = vld [vmem:[%s209_s0 + $0xd] sm:$0x1]   ;;  %v104_v2 = vld [vmem:[%s209_s0 + $0xe] sm:$0x1]  }
   0x2   :  { %7 = vrot.lane.b32.xlu0 %v103_v0, %s133_s10  ;;  %19 = vrot.lane.b32.xlu1 %v105_v1, %s134_s11  ;;  %v106_v3 = vld [vmem:[%s209_s0 + $0xc] sm:$0x1]   ;;  %s135_s16 = smov 112   ;;  %s136_s17 = smov 96   ;;  %v107_v4 = vld [vmem:[%s209_s0 + $0xb] sm:$0x1]  }
   0x3   :  { %v108_v5 = vld [vmem:[%s209_s0 + $0xa] sm:$0x1]   ;;  %v2_v6 = vld [vmem:[%s209_s0] sm:$0x1]   ;;  %s137_s24 = smov 88   ;;  %s138_s25 = smov 80  }
   0x4   :  { %4 = vst.msk [vmem:[#allocation0] sm:$0x1] %vm3_vm0, %v2_v6   ;;  %v109_v7 = vld [vmem:[%s209_s0 + $0x9] sm:$0x1]   ;;  %v110_v8 = vld [vmem:[%s209_s0 + $0x8] sm:$0x1]  }
   0x5   :  { %s139_s30 = smov 72   ;;  %s140_s2 = smov 64   ;;  %v111_v9 = vld [vmem:[%s209_s0 + $0x7] sm:$0x1]   ;;  %v112_v10 = vld [vmem:[%s209_s0 + $0x6] sm:$0x1]  }
   0x6   :  { %13 = vrot.lane.b32.xlu0 %v104_v2, %s135_s16  ;;  %25 = vrot.lane.b32.xlu1 %v106_v3, %s136_s17  ;;  %s141_s7 = smov 56   ;;  %s142_s8 = smov 48   ;;  %v113_v11 = vld [vmem:[%s209_s0 + $0x5] sm:$0x1]   ;;  %v114_v12 = vld [vmem:[%s209_s0 + $0x4] sm:$0x1]  }
   0x7   :  { %s143_s13 = smov 40   ;;  %s144_s14 = smov 32   ;;  %v115_v13 = vld [vmem:[%s209_s0 + $0x3] sm:$0x1]   ;;  %v116_v14 = vld [vmem:[%s209_s0 + $0x2] sm:$0x1]  }
   0x8   :  { %s145_s19 = smov 24   ;;  %s146_s20 = smov 16   ;;  %v117_v15 = vld [vmem:[%s209_s0 + $0x1] sm:$0x1]   ;;  %vm27_vm4 = vcmask 851712   ;;  %vm33_vm5 = vcmask 786112  }
   0x9   :  { %s147_s0 = smov 8   ;;  %vm39_vm6 = vcmask 720512   ;;  %vm45_vm7 = vcmask 654912   ;;  %vm51_vm8 = vcmask 589312   ;;  %vm57_vm9 = vcmask 523712  }
   0xa   :  { %31 = vrot.lane.b32.xlu0 %v107_v4, %s137_s24  ;;  %37 = vrot.lane.b32.xlu1 %v108_v5, %s138_s25  ;;  %vm63_vm10 = vcmask 458112   ;;  %vm69_vm11 = vcmask 392512   ;;  %vm75_vm12 = vcmask 326912   ;;  %vm81_vm13 = vcmask 261312  }
   0xb   :  { %vm87_vm14 = vcmask 195712   ;;  %vm93_vm15 = vcmask 130112  }
   0xe   :  { %43 = vrot.lane.b32.xlu0 %v109_v7, %s139_s30  ;;  %49 = vrot.lane.b32.xlu1 %v110_v8, %s140_s2 }
  0x12   :  { %55 = vrot.lane.b32.xlu0 %v111_v9, %s141_s7  ;;  %61 = vrot.lane.b32.xlu1 %v112_v10, %s142_s8 }
  0x16   :  { %67 = vrot.lane.b32.xlu0 %v113_v11, %s143_s13  ;;  %73 = vrot.lane.b32.xlu1 %v114_v12, %s144_s14 }
  0x1a   :  { %79 = vrot.lane.b32.xlu0 %v115_v13, %s145_s19  ;;  %85 = vrot.lane.b32.xlu1 %v116_v14, %s146_s20 }
  0x1e   :  { %91 = vrot.lane.b32.xlu0 %v117_v15, %s147_s0 }
  0x74   :  { %v8_v16 = vpop.permute.xlu0 %7   ;;  %v20_v17 = vpop.permute.xlu1 %19  }
  0x75   :  { %10 = vst.msk [vmem:[#allocation0] sm:$0x1] %vm9_vm1, %v8_v16  }
  0x78   :  { %v14_v18 = vpop.permute.xlu0 %13   ;;  %v26_v19 = vpop.permute.xlu1 %25  }
  0x79   :  { %16 = vst.msk [vmem:[#allocation0] sm:$0x1] %vm15_vm2, %v14_v18  }
  0x7a   :  { %22 = vst.msk [vmem:[#allocation0] sm:$0x1] %vm21_vm3, %v20_v17  }
  0x7b   :  { %28 = vst.msk [vmem:[#allocation0] sm:$0x1] %vm27_vm4, %v26_v19  }
  0x7c   :  { %v32_v20 = vpop.permute.xlu0 %31   ;;  %v38_v21 = vpop.permute.xlu1 %37  }
  0x7d   :  { %34 = vst.msk [vmem:[#allocation0] sm:$0x1] %vm33_vm5, %v32_v20  }
  0x7e   :  { %40 = vst.msk [vmem:[#allocation0] sm:$0x1] %vm39_vm6, %v38_v21  }
  0x80   :  { %v44_v22 = vpop.permute.xlu0 %43   ;;  %v50_v23 = vpop.permute.xlu1 %49  }
  0x81   :  { %46 = vst.msk [vmem:[#allocation0] sm:$0x1] %vm45_vm7, %v44_v22  }
  0x82   :  { %52 = vst.msk [vmem:[#allocation0] sm:$0x1] %vm51_vm8, %v50_v23  }
  0x84   :  { %v56_v24 = vpop.permute.xlu0 %55   ;;  %v62_v25 = vpop.permute.xlu1 %61  }
  0x85   :  { %58 = vst.msk [vmem:[#allocation0] sm:$0x1] %vm57_vm9, %v56_v24  }
  0x86   :  { %64 = vst.msk [vmem:[#allocation0] sm:$0x1] %vm63_vm10, %v62_v25  }
  0x88   :  { %v68_v26 = vpop.permute.xlu0 %67   ;;  %v74_v27 = vpop.permute.xlu1 %73  }
  0x89   :  { %70 = vst.msk [vmem:[#allocation0] sm:$0x1] %vm69_vm11, %v68_v26  }
  0x8a   :  { %76 = vst.msk [vmem:[#allocation0] sm:$0x1] %vm75_vm12, %v74_v27  }
  0x8c   :  { %v80_v28 = vpop.permute.xlu0 %79   ;;  %v86_v29 = vpop.permute.xlu1 %85  }
  0x8d   :  { %82 = vst.msk [vmem:[#allocation0] sm:$0x1] %vm81_vm13, %v80_v28  }
  0x8e   :  { %88 = vst.msk [vmem:[#allocation0] sm:$0x1] %vm87_vm14, %v86_v29  }
  0x90   :  { %v92_v30 = vpop.permute.xlu0 %91  }
  0x91   :  { %94 = vst.msk [vmem:[#allocation0] sm:$0x1] %vm93_vm15, %v92_v30  }
  0x98   :  { %v99_v31 = vld [vmem:[#allocation0] sm:$0x1] }
  0x99   :  { %102 = vst [vmem:[%s210_s1] sm:$0x1] %v99_v31 }

// kernel: conv_block_forward.1
= control target key start
LH: loop header
LB: loop body
LE: loop exit
PB: predicated region body
PF: predicated region fallthrough
CT: control target
= control target key end

     0   :  { %s687_s15 = smov 0   ;;  %s758_s0 = inlined_call_operand.vmem [shape: bf16[2,16,64], index: 0, kind: input, shape index: {}]   ;;  %s759_s1 = inlined_call_operand.vmem [shape: bf16[3,64,128], index: 1, kind: input, shape index: {}]   ;;  %s760_s2 = inlined_call_operand.vmem [shape: f32[1,128], index: 2, kind: input, shape index: {}]   ;;  %s761_s3 = inlined_call_operand.vmem [shape: f32[1,128], index: 3, kind: input, shape index: {}]   ;;  %s762_s4 = inlined_call_operand.vmem [shape: f32[2,16,128], index: 4, kind: output, shape index: {}]  }
   0x1 LB: > { %s531_s16 = sadd.s32 4294967295, %s658_s15   ;;  %p535_p0 = scmp.ge.s32.totalorder %s658_s15, 1  ;;  %s658_s15 = sphi %s687_s15, %s14_s15  }
   0x2   : > { %p162_p1 = scmp.lt.s32.totalorder %s658_s15, 3 }
   0x4   : > { %p163_p2 = pnand %p535_p0, %p162_p1 }
   0x5   : > { %p188_p3 = scmp.lt.s32.totalorder (!%p163_p2), %s531_s16, 1 }
   0x6   : > { %166 = sbr.rel (%p163_p2) target bundleno = 252 (0xfc), region = 36 }
   0xb   : > { %v639_v0 = vld [vmem:[%s759_s1 + $0x18] sm:$0xff]   ;;  %v660_v1 = vmov 0.0   ;;  %v640_v2 = vld [vmem:[%s759_s1 + $0x10] sm:$0xff]   ;;  %vm661_vm0 = vmmov 0   ;;  %s764_s16 = smov (!%p188_p3, %s531_s16), 1  ;;  %v641_v5 = vld [vmem:[%s759_s1 + $0x8] sm:$0xff]   ;;  %v366_v16 = vlaneseq }
   0xc   : > { %593 = vmatprep.subr.bf16.mxu0 %v660_v1  ;;  %605 = vmatprep.subr.bf16.mxu1 %v660_v1  ;;  %v642_v3 = vld [vmem:[%s759_s1 + $0x58] sm:$0xff]   ;;  %v644_v4 = vld [vmem:[%s759_s1 + $0x50] sm:$0xff]   ;;  %s576_s27 = sshll.u32 %s764_s16, 3  ;;  %v646_v6 = vld [vmem:[%s759_s1 + $0x48] sm:$0xff]   ;;  %vm247_vm1 = vcmask 523264   ;;  %s577_s25 = sshll.u32 %s764_s16, 4 }
   0xd   : > { %594 = vmatpush3.bf16.msra.mxu0 %v639_v0  ;;  %601 = vmatprep.mubr.msk.bf16.mxu0 %vm661_vm0, %v660_v1  ;;  %s192_s30 = scalar_lea.vmem %s758_s0, %s576_s27  ;;  %v643_v7 = vld [vmem:[%s759_s1] sm:$0xff]   ;;  %v647_v10 = vld [vmem:[%s759_s1 + $0x38] sm:$0xff]   ;;  %v649_v11 = vld [vmem:[%s759_s1 + $0x30] sm:$0xff]   ;;  %v367_v21 = vshrl.u32 %v366_v16, 7  ;;  %s197_s28 = scalar_lea.vmem %s762_s4, %s577_s25 }
   0xe   : > { %595 = vmatprep.subr.bf16.mxu0 %v660_v1  ;;  %613 = vmatprep.mubr.msk.bf16.mxu1 %vm661_vm0, %v660_v1  ;;  %v645_v8 = vld [vmem:[%s192_s30] sm:$0xff]   ;;  %v650_v12 = vld [vmem:[%s759_s1 + $0x28] sm:$0xff]  }
   0xf   : > { %606 = vmatpush3.bf16.msra.mxu1 %v642_v3  ;;  %v648_v9 = vld [vmem:[%s759_s1 + $0x40] sm:$0xff]   ;;  %vm373_vm2 = vcmp.lt.s32.totalorder %v367_v21, 1  ;;  %vm369_vm3 = vcmp.gt.s32.totalorder %v367_v21, 0  ;;  %vm447_vm4 = vcmp.lt.s32.totalorder %v367_v21, 7  ;;  %v368_v29 = vadd.s32 8, %v367_v21 }
  0x10   : > { %607 = vmatprep.subr.bf16.mxu1 %v660_v1  ;;  %v651_v13 = vld [vmem:[%s759_s1 + $0x20] sm:$0xff]  }
  0x11   : > { %596 = vmatpush3.bf16.msra.mxu0 %v640_v2  ;;  %v572_v34 = vld [vmem:[%s760_s2] ss:$0 sm:$0xff]  ;;  %vm444_vm5 = vcmp.lt.s32.totalorder %v368_v29, 15 }
  0x12   : > { %597 = vmatprep.subr.bf16.mxu0 %v660_v1  ;;  %v573_v38 = vld [vmem:[%s761_s3] ss:$0 sm:$0xff] }
  0x13   : > { %608 = vmatpush3.bf16.msra.mxu1 %v644_v4 }
  0x14   : > { %609 = vmatprep.subr.bf16.mxu1 %v660_v1 }
  0x15   : > { %598 = vmatpush3.bf16.msra.mxu0 %v641_v5 }
  0x16   : > { %599 = vmatprep.subr.bf16.mxu0 %v660_v1 }
  0x17   : > { %610 = vmatpush3.bf16.msra.mxu1 %v646_v6 }
  0x18   : > { %611 = vmatprep.subr.bf16.mxu1 %v660_v1 }
  0x19   : > { %600 = vmatpush3.bf16.msra.mxu0 %v643_v7 }
  0x1a   : > { %617 = vmatprep.subr.bf16.mxu0 %v660_v1 }
  0x1b   : > { %612 = vmatpush3.bf16.msra.mxu1 %v648_v9 }
  0x1c   : > { %602 = vmatmul.mubr.msk.bf16.vlgmr.msra.gmra.mxu0 %vm247_vm1, %v645_v8 }
  0x1d   : > { %618 = vmatpush3.bf16.msra.mxu0 %v647_v10  ;;  %625 = vmatprep.mubr.msk.bf16.mxu0 %vm661_vm0, %v660_v1 }
  0x1e   : > { %619 = vmatprep.subr.bf16.mxu0 %v660_v1  ;;  %614 = vmatmul.mubr.msk.bf16.vlgmr.msra.gmra.mxu1 %vm247_vm1, %v645_v8 }
  0x21   : > { %620 = vmatpush3.bf16.msra.mxu0 %v649_v11 }
  0x22   : > { %621 = vmatprep.subr.bf16.mxu0 %v660_v1 }
  0x25   : > { %622 = vmatpush3.bf16.msra.mxu0 %v650_v12 }
  0x26   : > { %623 = vmatprep.subr.bf16.mxu0 %v660_v1 }
  0x29   : > { %624 = vmatpush3.bf16.msra.mxu0 %v651_v13 }
  0x2c   : > { %626 = vmatmul.mubr.msk.bf16.vlgmr.msra.gmra.mxu0 %vm247_vm1, %v645_v8 }
  0xdc   : > { %v285_v14 = vpop.f32.mrf.mxu0 }
  0xdd   : > { %v371_v25 = vrot.slane %v285_v14, 7 }
  0xde   : > { %v603_v15 = vpop.f32.mrf.mxu0  ;;  %v359_v17 = vpop.f32.mrf.mxu1 }
  0xdf   : > { %v445_v26 = vrot.slane %v359_v17, 1 }
  0xe0   : > { %v288_v18 = vpop.f32.mrf.mxu0  ;;  %v615_v19 = vpop.f32.mrf.mxu1 }
  0xe1   : > { %v372_v23 = vrot.slane %v288_v18, 7 }
  0xe2   : > { %v604_v20 = vpop.f32.mrf.mxu0  ;;  %v362_v22 = vpop.f32.mrf.mxu1 }
  0xe3   : > { %v446_v27 = vrot.slane %v362_v22, 1  ;;  %v375_v28 = vsel %vm373_vm2, %v372_v23, %v371_v25  ;;  %v374_v39 = vsel %vm373_vm2, %v371_v25, %v372_v23 }
  0xe4   : > { %v616_v24 = vpop.f32.mrf.mxu1  ;;  %v376_v30 = vsel %vm369_vm3, %v375_v28, 0.0 }
  0xe5   : > { %v448_v32 = vsel %vm447_vm4, %v445_v26, %v446_v27  ;;  %v449_v37 = vsel %vm447_vm4, %v446_v27, %v445_v26 }
  0xe6   : > { %v451_v43 = vsel %vm444_vm5, %v449_v37, 0.0 }
  0xec   : > { %v436_v31 = vpop.f32.mrf.mxu0 }
  0xed   : > { %v437_v33 = vadd.f32 %v436_v31, %v376_v30 }
  0xee   : > { %v627_v35 = vpop.f32.mrf.mxu0 }
  0xef   : > { %v452_v36 = vadd.f32 %v448_v32, %v437_v33 }
  0xf0   : > { %v439_v40 = vpop.f32.mrf.mxu0 }
  0xf1   : > { %v461_v41 = vmul.f32 %v572_v34, %v452_v36  ;;  %v440_v42 = vadd.f32 %v439_v40, %v374_v39 }
  0xf2   : > { %v628_v44 = vpop.f32.mrf.mxu0 }
  0xf3   : > { %v470_v45 = vadd.f32 %v573_v38, %v461_v41  ;;  %v453_v46 = vadd.f32 %v451_v43, %v440_v42 }
  0xf5   : > { %v472_v47 = vmax.f32 %v470_v45, 0.0  ;;  %v462_v48 = vmul.f32 %v572_v34, %v453_v46 }
  0xf7   : > { %474 = vst [vmem:[%s197_s28] sm:$0xff] %v472_v47  ;;  %v471_v49 = vadd.f32 %v573_v38, %v462_v48 }
  0xf9   : > { %v473_v50 = vmax.f32 %v471_v49, 0.0 }
  0xfb   : > { %475 = vst [vmem:[%s197_s28 + $0x8] sm:$0xff] %v473_v50 }
  0xfc PF: > { %s14_s15 = sadd.s32 1, %s658_s15  }
  0xfd   : > { %p11_p4 = scmp.ge.s32.totalorder %s14_s15, 4  }
  0xff   :  { %13 = sbr.rel (!%p11_p4) target bundleno = 1 (0x1), region = 68 }

</bundles_post_ra>
